<compile_context>
chip_gen: v5e
topology: v5e:2x2
jax: 0.10.0
libtpu: 0.0.40
codegen_flags: <defaults>
</compile_context>

<pallas_src>
import math

import jax
import jax.numpy as jnp
from jax.experimental import pallas as pl
from jax.experimental.pallas import tpu as pltpu


# ----------------------------- helpers --------------------------------------

def _round_up(x, m):
    return (x + m - 1) // m * m


def _pick_tile(dim, unit, cap):
    """Largest multiple-of-`unit` divisor of `dim` that is <= cap."""
    assert dim >= unit and dim % unit == 0, (dim, unit)
    best = unit
    t = unit
    while t <= min(dim, cap):
        if dim % t == 0:
            best = t
        t += unit
    return best


# --------------------------- Pallas matmul kernels ---------------------------

def _matmul_kernel(x_ref, w_ref, o_ref, acc_ref):
    @pl.when(pl.program_id(2) == 0)
    def _init():
        acc_ref[...] = jnp.zeros_like(acc_ref)

    acc_ref[...] += jnp.dot(x_ref[...], w_ref[...],
                            preferred_element_type=jnp.float32)

    @pl.when(pl.program_id(2) == pl.num_programs(2) - 1)
    def _finalize():
        o_ref[...] = acc_ref[...].astype(o_ref.dtype)


def _matmul_bias_kernel(x_ref, w_ref, b_ref, o_ref, acc_ref):
    @pl.when(pl.program_id(2) == 0)
    def _init():
        acc_ref[...] = jnp.zeros_like(acc_ref)

    acc_ref[...] += jnp.dot(x_ref[...], w_ref[...],
                            preferred_element_type=jnp.float32)

    @pl.when(pl.program_id(2) == pl.num_programs(2) - 1)
    def _finalize():
        # Bias folded once into the finalize epilogue (not per K step).
        o_ref[...] = (acc_ref[...] + b_ref[...].astype(jnp.float32)
                      ).astype(o_ref.dtype)


def pallas_linear(x, w, b=None, *, out_dtype=jnp.float32):
    """out[M, N] = x[M, K] @ w[K, N] (+ b[1, N]).

    Requires pre-padded operands: M % 8 == 0, K % 128 == 0, N % 128 == 0.
    K is tiled so weight DMA pipelines with compute and VMEM stays bounded.
    """
    M, K = x.shape
    Kw, N = w.shape
    assert K == Kw, (K, Kw)
    assert M % 8 == 0 and K % 128 == 0 and N % 128 == 0, (M, K, N)

    # Larger tile caps: fewer grid steps / accumulator epilogues; worst-case
    # double-buffered working set stays well under even v7x's 64 MiB VMEM.
    tm = _pick_tile(M, 8, 256)
    tn = _pick_tile(N, 128, 512)
    tk = _pick_tile(K, 128, 2048)
    grid = (M // tm, N // tn, K // tk)

    in_specs = [
        pl.BlockSpec((tm, tk), lambda i, j, k: (i, k)),
        pl.BlockSpec((tk, tn), lambda i, j, k: (k, j)),
    ]
    operands = [x, w]
    kernel = _matmul_kernel
    out_isz = jnp.dtype(out_dtype).itemsize
    # Re-streaming-aware traffic: x is re-read once per N tile, w once per M tile.
    bytes_accessed = (x.size * x.dtype.itemsize * (N // tn)
                      + w.size * w.dtype.itemsize * (M // tm)
                      + M * N * out_isz)
    if b is not None:
        assert b.shape == (1, N), b.shape
        in_specs.append(pl.BlockSpec((1, tn), lambda i, j, k: (0, j)))
        operands.append(b)
        kernel = _matmul_bias_kernel
        bytes_accessed += b.size * b.dtype.itemsize * (M // tm)

    # Double-buffered VMEM working-set estimate -> explicit vmem limit
    # (>= v5e's 16 MiB scoped default, <= v7x's 64 MiB physical).
    est = (2 * (tm * tk * x.dtype.itemsize + tk * tn * w.dtype.itemsize)
           + 2 * tm * tn * out_isz + tm * tn * 4)
    if b is not None:
        est += 2 * tn * 4
    vmem_limit = int(min(max(2 * est + (8 << 20), 32 << 20), 64 << 20))

    return pl.pallas_call(
        kernel,
        out_shape=jax.ShapeDtypeStruct((M, N), out_dtype),
        grid=grid,
        in_specs=in_specs,
        out_specs=pl.BlockSpec((tm, tn), lambda i, j, k: (i, j)),
        scratch_shapes=[pltpu.VMEM((tm, tn), jnp.float32)],
        compiler_params=pltpu.CompilerParams(
            dimension_semantics=("parallel", "parallel", "arbitrary"),
            vmem_limit_bytes=vmem_limit),
        cost_estimate=pl.CostEstimate(
            flops=2 * M * N * K,
            transcendentals=0,
            bytes_accessed=bytes_accessed),
    )(*operands)


# ------------------- fused normalize + scaled similarity --------------------

def _clip_logits_kernel(scale_ref, img_ref, brn_ref, out_ref):
    img = img_ref[...].astype(jnp.float32)
    brn = brn_ref[...].astype(jnp.float32)
    # L2 normalize rows (eps keeps zero-padded rows finite; real rows unaffected).
    img_n = img * jax.lax.rsqrt(
        jnp.sum(img * img, axis=-1, keepdims=True) + 1e-12)
    brn_n = brn * jax.lax.rsqrt(
        jnp.sum(brn * brn, axis=-1, keepdims=True) + 1e-12)
    scale = jnp.exp(scale_ref[...].astype(jnp.float32))            # (1, 1)
    dn = (((1,), (1,)), ((), ()))                                  # contract last dims
    li = jax.lax.dot_general(img_n, brn_n, dn,
                             preferred_element_type=jnp.float32) * scale
    out_ref[...] = li.astype(out_ref.dtype)
    # logits_per_brain is NOT computed here: it is exactly the transpose and is
    # produced for free in the wrapper (halves MXU work + writeback).


def clip_logits(image_features, brain_features, logit_scale):
    """logits_per_image[Bq, Bk] = exp(scale) * norm(img) @ norm(brain).T.

    image_features: [Bq, P] f32 (Bq % 8 == 0), brain_features: [Bk, P] f32
    (Bk % 128 == 0 so the logits output is lane-dense), logit_scale: (1,1) f32.
    Grid tiles query rows x key rows; the feature dim P stays resident.
    """
    Bq, P = image_features.shape
    Bk, Pb = brain_features.shape
    assert P == Pb and P % 128 == 0, (P, Pb)
    assert Bq % 8 == 0 and Bk % 128 == 0, (Bq, Bk)

    tq = _pick_tile(Bq, 8, 256)
    tk = _pick_tile(Bk, 128, 512)
    grid = (Bq // tq, Bk // tk)

    return pl.pallas_call(
        _clip_logits_kernel,
        out_shape=jax.ShapeDtypeStruct((Bq, Bk), jnp.float32),
        grid=grid,
        in_specs=[
            pl.BlockSpec((1, 1), lambda i, j: (0, 0)),
            pl.BlockSpec((tq, P), lambda i, j: (i, 0)),
            pl.BlockSpec((tk, P), lambda i, j: (j, 0)),
        ],
        out_specs=pl.BlockSpec((tq, tk), lambda i, j: (i, j)),
        compiler_params=pltpu.CompilerParams(
            dimension_semantics=("parallel", "parallel")),
        cost_estimate=pl.CostEstimate(
            flops=2 * Bq * Bk * P,
            transcendentals=Bq * (Bk // tk) + Bk * (Bq // tq) + 1,
            bytes_accessed=(image_features.size * 4 * (Bk // tk)
                            + brain_features.size * 4 * (Bq // tq)
                            + Bq * Bk * 4)),
    )(logit_scale, image_features, brain_features)


# --------------------------- Module equivalents ------------------------------

class ClipLoss:
    """CLIP loss (plain-JAX glue; not part of BrainyModel.forward)."""

    def __call__(self, logits_per_image, logits_per_brain):
        return self.forward(logits_per_image, logits_per_brain)

    def forward(self, logits_per_image, logits_per_brain):
        n = logits_per_image.shape[0]
        labels = jnp.arange(n)

        def ce(logits):
            logp = jax.nn.log_softmax(logits, axis=-1)
            return -jnp.mean(logp[jnp.arange(n), labels])

        return (ce(logits_per_image) + ce(logits_per_brain)) / 2


class ModalityEncoder:
    """JAX mirror of the abstract torch base class."""

    def __init__(self):
        self.identifier = None
        self.encoder = None
        self.feature_dim = None

    def forward(self, x):
        raise NotImplementedError

    def __call__(self, x):
        return self.forward(x)


class LinearModalityEncoder(ModalityEncoder):
    """Concrete encoder: flatten -> linear (Pallas tiled matmul + fused bias)."""

    def __init__(self, identifier, in_features, feature_dim, key):
        super().__init__()
        self.identifier = identifier
        self.feature_dim = feature_dim
        self.in_features = in_features
        self.kp = _round_up(in_features, 128)            # lane-dense K
        self.np_ = _round_up(feature_dim, 128)           # lane-dense N
        kw, kb = jax.random.split(key)
        w = jax.random.normal(kw, (in_features, feature_dim), jnp.float32)
        w = w * (1.0 / math.sqrt(in_features))
        b = jax.random.normal(kb, (1, feature_dim), jnp.float32) * 0.01
        self.w_f32 = w                                   # raw params (for folding)
        self.b_f32 = b
        # Padded standalone parameters (used only if the encoder runs alone).
        self.w_pad = jnp.zeros((self.kp, self.np_), jnp.bfloat16
                               ).at[:in_features, :feature_dim].set(w.astype(jnp.bfloat16))
        self.b_pad = jnp.zeros((1, self.np_), jnp.float32).at[:, :feature_dim].set(b)
        self.encoder = lambda xp: pallas_linear(xp, self.w_pad, self.b_pad)

    def flatten_pad(self, x, row_multiple=8):
        """[B, ...] -> zero-padded [round_up(B, row_multiple), kp] bf16."""
        B = x.shape[0]
        x2 = x.reshape(B, -1)
        Bp = _round_up(max(B, 1), row_multiple)
        xp = jnp.zeros((Bp, self.kp), jnp.bfloat16)
        return xp.at[:B, :x2.shape[1]].set(x2.astype(jnp.bfloat16))

    def forward(self, x):
        return self.encoder(self.flatten_pad(x))


class ProjectionHead:
    """Bias-free linear projection head (Pallas tiled matmul)."""

    def __init__(self, input_dim, projection_dim, key):
        self.input_dim = input_dim
        self.projection_dim = projection_dim
        self._inp = _round_up(input_dim, 128)
        self._outp = _round_up(projection_dim, 128)
        w = jax.random.normal(key, (input_dim, projection_dim), jnp.float32)
        w = w * (1.0 / math.sqrt(input_dim))
        self.w_f32 = w                                   # raw params (for folding)
        self.w_pad = jnp.zeros((self._inp, self._outp), jnp.bfloat16
                               ).at[:input_dim, :projection_dim].set(w.astype(jnp.bfloat16))

    def forward(self, x):
        return pallas_linear(x.astype(jnp.bfloat16), self.w_pad, None)

    def __call__(self, x):
        return self.forward(x)


class BrainyModel:
    """JAX/Pallas mirror of the torch BrainyModel."""

    def __init__(self, image_encoder, brain_encoder, loss,
                 image_embedding_dim, brain_embedding_dim,
                 projection_embedding, identifier, key):
        self.image_encoder = image_encoder
        self.brain_encoder = brain_encoder
        self.loss = (loss,)                       # mirrors the torch tuple quirk
        kb, ki = jax.random.split(key)
        self.brain_projection = ProjectionHead(brain_embedding_dim,
                                               projection_embedding, kb)
        self.image_projection = ProjectionHead(image_embedding_dim,
                                               projection_embedding, ki)
        self.identifier = identifier
        self.logit_scale = jnp.full((1, 1), math.log(1.0 / 0.07), jnp.float32)
        self._proj_pad = _round_up(projection_embedding, 128)

        # The encoder and projection are back-to-back linears with nothing in
        # between -> fold them on the host so each modality runs as a SINGLE
        # Pallas matmul (no [Bp, emb] f32 HBM intermediate, one fewer launch).
        self._image_w, self._image_b = self._fuse(image_encoder, self.image_projection)
        self._brain_w, self._brain_b = self._fuse(brain_encoder, self.brain_projection)

    def _fuse(self, enc, proj):
        w = enc.w_f32 @ proj.w_f32                       # [in_features, proj] f32
        b = enc.b_f32 @ proj.w_f32                       # [1, proj] f32
        wp = jnp.zeros((enc.kp, self._proj_pad), jnp.bfloat16
                       ).at[:w.shape[0], :w.shape[1]].set(w.astype(jnp.bfloat16))
        bp = jnp.zeros((1, self._proj_pad), jnp.float32).at[:, :b.shape[1]].set(b)
        return wp, bp

    def _encode_fused(self, x, enc, w, b, row_multiple):
        return pallas_linear(enc.flatten_pad(x, row_multiple), w, b)

    def encode_image(self, image_input, row_multiple=8):
        # encoder -> projection, algebraically identical to the torch chain.
        return self._encode_fused(image_input, self.image_encoder,
                                  self._image_w, self._image_b, row_multiple)

    def encode_brain(self, brain_input, row_multiple=8):
        return self._encode_fused(brain_input, self.brain_encoder,
                                  self._brain_w, self._brain_b, row_multiple)

    def forward(self, brain_signals, images):
        B = brain_signals.shape[0]
        # Brain batch padded to a multiple of 128 so the logits output's last
        # (lane) dim is dense; image batch only needs sublane (8) alignment.
        brain_features = self.encode_brain(brain_signals, row_multiple=128)
        image_features = self.encode_image(images, row_multiple=8)
        # Fused: L2 normalize + logit_scale.exp() + scaled cross-similarity.
        lpi_pad = clip_logits(image_features, brain_features, self.logit_scale)
        lpi = lpi_pad[:B, :B]
        return lpi, lpi.T        # logits_per_brain is exactly the transpose

    def __call__(self, brain_signals, images):
        return self.forward(brain_signals, images)


# ------------------------------ reference ------------------------------------

def _reference_forward(model, brain_signals, images):
    """Plain-JAX mirror (same fused/padded params and bf16 casts as the kernels)."""

    def enc(e, w_pad, b_pad, x, row_multiple):
        B = x.shape[0]
        x2 = x.reshape(B, -1)
        Bp = _round_up(B, row_multiple)
        xp = jnp.zeros((Bp, e.kp), jnp.float32).at[:B, :x2.shape[1]].set(x2)
        return jnp.dot(xp.astype(jnp.bfloat16), w_pad,
                       preferred_element_type=jnp.float32) + b_pad

    bf = enc(model.brain_encoder, model._brain_w, model._brain_b, brain_signals, 128)
    imf = enc(model.image_encoder, model._image_w, model._image_b, images, 8)
    bn = bf * jax.lax.rsqrt(jnp.sum(bf * bf, -1, keepdims=True) + 1e-12)
    imn = imf * jax.lax.rsqrt(jnp.sum(imf * imf, -1, keepdims=True) + 1e-12)
    scale = jnp.exp(model.logit_scale[0, 0])
    B = brain_signals.shape[0]
    lpi = (scale * imn @ bn.T)[:B, :B]
    return lpi, lpi.T


# --------------------------------- main --------------------------------------

if __name__ == "__main__":
    key = jax.random.PRNGKey(0)
    k_img, k_brn, k_ie, k_be, k_model = jax.random.split(key, 5)

    B, C, H, W = 2, 4, 16, 16          # images: NCHW
    seq, hidden = 8, 32                # brain signals: [B, seq, hidden]
    image_embedding_dim = 32
    brain_embedding_dim = 32
    projection_embedding = 32

    images = jax.random.normal(k_img, (B, C, H, W), jnp.float32)
    brain_signals = jax.random.normal(k_brn, (B, seq, hidden), jnp.float32)

    # Abstract base behaves like the torch reference.
    base = ModalityEncoder()
    try:
        base(images)
        raise AssertionError("ModalityEncoder.forward must be abstract")
    except NotImplementedError:
        pass

    image_encoder = LinearModalityEncoder("image_linear", C * H * W,
                                          image_embedding_dim, k_ie)
    brain_encoder = LinearModalityEncoder("brain_linear", seq * hidden,
                                          brain_embedding_dim, k_be)
    model = BrainyModel(image_encoder, brain_encoder, ClipLoss(),
                        image_embedding_dim, brain_embedding_dim,
                        projection_embedding, "brainy", k_model)

    lpi, lpb = model(brain_signals, images)
    lpi, lpb = jax.block_until_ready((lpi, lpb))

    assert lpi.shape == (B, B) and lpb.shape == (B, B), (lpi.shape, lpb.shape)

    ref_lpi, ref_lpb = _reference_forward(model, brain_signals, images)
    assert jnp.allclose(lpi, ref_lpi, atol=1e-2, rtol=1e-2), "logits_per_image mismatch"
    assert jnp.allclose(lpb, ref_lpb, atol=1e-2, rtol=1e-2), "logits_per_brain mismatch"
    assert bool(jnp.array_equal(lpi, lpb.T)), "transpose relation must be exact"

    loss = ClipLoss()(lpi, lpb)
    assert bool(jnp.isfinite(loss)), loss

    print("KERNEL_OK")
</pallas_src>

<mosaic_0001>
module attributes {stable_mosaic.version = 11 : i64} {
  func.func @_matmul_bias_kernel(%arg0: i32, %arg1: i32, %arg2: i32, %arg3: memref<128x256xbf16, #tpu.memory_space<vmem>>, %arg4: memref<256x128xbf16, #tpu.memory_space<vmem>>, %arg5: memref<1x128xf32, #tpu.memory_space<vmem>>, %arg6: memref<128x128xf32, #tpu.memory_space<vmem>>, %arg7: memref<128x128xf32, #tpu.memory_space<vmem>>) attributes {dimension_semantics = [#tpu.dimension_semantics<parallel>, #tpu.dimension_semantics<parallel>, #tpu.dimension_semantics<arbitrary>], iteration_bounds = array<i64: 1, 1, 1>, scalar_prefetch = 0 : i64, scratch_operands = 1 : i64, tpu.core_type = #tpu.core_type<tc>, window_params = [{transform_indices = @transform_0, window_bounds = array<i64: 128, 256>}, {transform_indices = @transform_1, window_bounds = array<i64: 256, 128>}, {transform_indices = @transform_2, window_bounds = array<i64: 1, 128>}, {transform_indices = @transform_3, window_bounds = array<i64: 128, 128>}]} {
    %c0_i32 = arith.constant 0 : i32
    %0 = arith.cmpi eq, %arg2, %c0_i32 : i32
    %1 = arith.extui %0 : i1 to i32
    %c0_i32_0 = arith.constant 0 : i32
    %2 = arith.cmpi ne, %1, %c0_i32_0 : i32
    scf.if %2 {
      %cst_10 = arith.constant 0.000000e+00 : f32
      %12 = vector.broadcast %cst_10 : f32 to vector<128x128xf32>
      %c0_11 = arith.constant 0 : index
      %c0_12 = arith.constant 0 : index
      %13 = vector.load %arg7[%c0_11, %c0_12] : memref<128x128xf32, #tpu.memory_space<vmem>>, vector<128x128xf32>
      tpu.vector_store %arg7[%c0_11, %c0_12], %12 {strides = array<i32>} : memref<128x128xf32, #tpu.memory_space<vmem>>, vector<128x128xf32>,
    } else {
    }
    %c0 = arith.constant 0 : index
    %c0_1 = arith.constant 0 : index
    %3 = vector.load %arg7[%c0, %c0_1] : memref<128x128xf32, #tpu.memory_space<vmem>>, vector<128x128xf32>
    %c0_2 = arith.constant 0 : index
    %c0_3 = arith.constant 0 : index
    %4 = vector.load %arg3[%c0_2, %c0_3] : memref<128x256xbf16, #tpu.memory_space<vmem>>, vector<128x256xbf16>
    %c0_4 = arith.constant 0 : index
    %c0_5 = arith.constant 0 : index
    %5 = vector.load %arg4[%c0_4, %c0_5] : memref<256x128xbf16, #tpu.memory_space<vmem>>, vector<256x128xbf16>
    %cst = arith.constant dense<0.000000e+00> : vector<128x128xf32>
    %6 = tpu.matmul %4, %5, %cst {dimension_numbers = #tpu.dot_dimension_numbers<[1], [0], [0], [1], [0, 0, 1, 1], [], []>} : vector<128x256xbf16>, vector<256x128xbf16>, vector<128x128xf32> -> vector<128x128xf32>
    %7 = arith.addf %3, %6 : vector<128x128xf32>
    %c0_6 = arith.constant 0 : index
    %c0_7 = arith.constant 0 : index
    %8 = vector.load %arg7[%c0_6, %c0_7] : memref<128x128xf32, #tpu.memory_space<vmem>>, vector<128x128xf32>
    tpu.vector_store %arg7[%c0_6, %c0_7], %7 {strides = array<i32>} : memref<128x128xf32, #tpu.memory_space<vmem>>, vector<128x128xf32>,
    %c0_i32_8 = arith.constant 0 : i32
    %9 = arith.cmpi eq, %arg2, %c0_i32_8 : i32
    %10 = arith.extui %9 : i1 to i32
    %c0_i32_9 = arith.constant 0 : i32
    %11 = arith.cmpi ne, %10, %c0_i32_9 : i32
    scf.if %11 {
      %c0_10 = arith.constant 0 : index
      %c0_11 = arith.constant 0 : index
      %12 = vector.load %arg7[%c0_10, %c0_11] : memref<128x128xf32, #tpu.memory_space<vmem>>, vector<128x128xf32>
      %c0_12 = arith.constant 0 : index
      %c0_13 = arith.constant 0 : index
      %13 = vector.load %arg5[%c0_12, %c0_13] : memref<1x128xf32, #tpu.memory_space<vmem>>, vector<1x128xf32>
      %14 = vector.broadcast %13 : vector<1x128xf32> to vector<128x128xf32>
      %15 = arith.addf %12, %14 : vector<128x128xf32>
      %c0_14 = arith.constant 0 : index
      %c0_15 = arith.constant 0 : index
      %16 = vector.load %arg6[%c0_14, %c0_15] : memref<128x128xf32, #tpu.memory_space<vmem>>, vector<128x128xf32>
      tpu.vector_store %arg6[%c0_14, %c0_15], %15 {strides = array<i32>} : memref<128x128xf32, #tpu.memory_space<vmem>>, vector<128x128xf32>,
    } else {
    }
    return
  }
  func.func @transform_0(%arg0: i32, %arg1: i32, %arg2: i32) -> (i32, i32) {
    %c0_i32 = arith.constant 0 : i32
    return %arg0, %arg2 : i32, i32
  }
  func.func @transform_1(%arg0: i32, %arg1: i32, %arg2: i32) -> (i32, i32) {
    %c0_i32 = arith.constant 0 : i32
    return %arg2, %arg1 : i32, i32
  }
  func.func @transform_2(%arg0: i32, %arg1: i32, %arg2: i32) -> (i32, i32) {
    %c0_i32 = arith.constant 0 : i32
    %c0_i32_0 = arith.constant 0 : i32
    return %c0_i32, %arg1 : i32, i32
  }
  func.func @transform_3(%arg0: i32, %arg1: i32, %arg2: i32) -> (i32, i32) {
    %c0_i32 = arith.constant 0 : i32
    return %arg0, %arg1 : i32, i32
  }
}

</mosaic_0001>

<bundles_post_ra>
// kernel: tpu_custom_call.1
= control target key start
LH: loop header
LB: loop body
LE: loop exit
PB: predicated region body
PF: predicated region fallthrough
CT: control target
= control target key end

     0   :  { %8 = vsyncpa [#allocation4], 0  ;;  %s837_s0 = inlined_call_operand.hbm [shape: bf16[128,256], index: 0, kind: input, shape index: {}]   ;;  %s838_s1 = inlined_call_operand.hbm [shape: bf16[256,128], index: 1, kind: input, shape index: {}]   ;;  %s839_s2 = inlined_call_operand.vmem [shape: f32[1,128], index: 2, kind: input, shape index: {}]   ;;  %s840_s3 = inlined_call_operand.hbm [shape: f32[128,128], index: 3, kind: output, shape index: {}]  }
   0x1   :  { %9 = vsyncpa [#allocation7], 0 }
   0x2   :  { %10 = vsyncpa [#allocation5], 0  ;;  %s15_s14 = sshll.u32 %s837_s0, 4  ;;  %s774_s15 = smov [#allocation3]   ;;  %s16_s14 = int_to_ptr.hbm [resolvable:$true] %s15_s14 }
   0x3   :  { %s17_s16 = sshll.u32 %s774_s15, 4  ;;  %s28_s19 = sshll.u32 %s838_s1, 4  ;;  %s18_s16 = int_to_ptr.vmem [resolvable:$true] %s17_s16  ;;  %s29_s19 = int_to_ptr.hbm [resolvable:$true] %s28_s19 }
   0x4   :  { %s775_s20 = smov 128   ;;  %s776_s21 = smov 8  }
   0x5   :  { %23 = dma.hbm_to_vmem [thread:$0]  %s16_s14, 2048, %s18_s16, [#allocation4], %s775_s20, %s775_s20, %s776_s21  }
   0x6   :  { %s777_s22 = smov [#allocation6]   ;;  %s778_s24 = smov 64  }
   0x7   :  { %s30_s23 = sshll.u32 %s777_s22, 4  ;;  %s779_s0 = smov 4   ;;  %s31_s23 = int_to_ptr.vmem [resolvable:$true] %s30_s23 }
   0x8   :  { %36 = dma.hbm_to_vmem [thread:$0]  %s29_s19, 2048, %s31_s23, [#allocation7], %s778_s24, %s778_s24, %s779_s0  }
   0x9   :  { %768 = dma.done.wait [#allocation4], 2048  }
   0xa   :  { %769 = vsyncadd [#allocation4], 4294965248 }
   0xb   :  { %770 = dma.done.wait [#allocation7], 2048  }
   0xc   :  { %771 = vsyncadd [#allocation7], 4294965248  ;;  %v663_v0 = vld [vmem:[#allocation6 + $0x38] sm:$0xff]  ;;  %v662_v2 = vld [vmem:[#allocation6 + $0x30] sm:$0xff]  ;;  %s498_s29 = sshll.u32 %s840_s3, 4  ;;  %s499_s29 = int_to_ptr.hbm [resolvable:$true] %s498_s29 }
   0xd   :  { %v671_v1 = vld [vmem:[#allocation6 + $0x78] sm:$0xff]  ;;  %307 = vmatpush.bf16.msra.mxu0 %v663_v0  ;;  %672 = vmatpush.bf16.msra.mxu2 %v663_v0  ;;  %v670_v3 = vld [vmem:[#allocation6 + $0x70] sm:$0xff]  ;;  %v661_v4 = vld [vmem:[#allocation6 + $0x28] sm:$0xff] }
   0xe   :  { %356 = vmatpush.bf16.msra.mxu1 %v671_v1  ;;  %680 = vmatpush.bf16.msra.mxu3 %v671_v1  ;;  %v669_v5 = vld [vmem:[#allocation6 + $0x68] sm:$0xff]  ;;  %v660_v6 = vld [vmem:[#allocation6 + $0x20] sm:$0xff]  ;;  %v659_v8 = vld [vmem:[#allocation6 + $0x18] sm:$0xff] }
   0xf   :  { %v668_v7 = vld [vmem:[#allocation6 + $0x60] sm:$0xff]  ;;  %v667_v9 = vld [vmem:[#allocation6 + $0x58] sm:$0xff]  ;;  %v658_v10 = vld [vmem:[#allocation6 + $0x10] sm:$0xff] }
  0x10   :  { %v666_v11 = vld [vmem:[#allocation6 + $0x50] sm:$0xff]  ;;  %v657_v12 = vld [vmem:[#allocation6 + $0x8] sm:$0xff]  ;;  %v656_v14 = vld [vmem:[#allocation6] sm:$0xff] }
  0x11   :  { %308 = vmatpush.bf16.msra.mxu0 %v662_v2  ;;  %673 = vmatpush.bf16.msra.mxu2 %v662_v2  ;;  %v665_v13 = vld [vmem:[#allocation6 + $0x48] sm:$0xff]  ;;  %v664_v15 = vld [vmem:[#allocation6 + $0x40] sm:$0xff]  ;;  %v522_v28 = vld [vmem:[#allocation3 + $0x10] sm:$0xf] }
  0x12   :  { %357 = vmatpush.bf16.msra.mxu1 %v670_v3  ;;  %681 = vmatpush.bf16.msra.mxu3 %v670_v3  ;;  %v514_v16 = vld [vmem:[#allocation3] sm:$0xf]  ;;  %v641_v17 = vld [vmem:[#allocation3 + $0x4] sm:$0xf0]  ;;  %v640_v20 = vld [vmem:[#allocation3 + $0x4] sm:$0xf] }
  0x13   :  { %v546_v18 = vld [vmem:[#allocation3 + $0x40] sm:$0xf]  ;;  %v649_v19 = vld [vmem:[#allocation3 + $0x44] sm:$0xf0]  ;;  %v516_v21 = vld [vmem:[#allocation3 + $0x8] sm:$0xf0]  ;;  %v515_v24 = vor.u32 %v641_v17, %v514_v16 }
  0x14   :  { %v648_v22 = vld [vmem:[#allocation3 + $0x44] sm:$0xf]  ;;  %v548_v23 = vld [vmem:[#allocation3 + $0x48] sm:$0xf0]  ;;  %v547_v25 = vor.u32 %v649_v19, %v546_v18  ;;  %v519_v26 = vor.u32 %v640_v20, %v516_v21  ;;  %v643_v29 = vld [vmem:[#allocation3 + $0x14] sm:$0xf0] }
  0x15   :  { %309 = vmatpush.bf16.msra.mxu0 %v661_v4  ;;  %674 = vmatpush.bf16.msra.mxu2 %v661_v4  ;;  %v551_v27 = vor.u32 %v648_v22, %v548_v23  ;;  %v554_v30 = vld [vmem:[#allocation3 + $0x50] sm:$0xf]  ;;  %v651_v31 = vld [vmem:[#allocation3 + $0x54] sm:$0xf0]  ;;  %v642_v32 = vld [vmem:[#allocation3 + $0x14] sm:$0xf]  ;;  %v523_v36 = vor.u32 %v643_v29, %v522_v28 }
  0x16   :  { %358 = vmatpush.bf16.msra.mxu1 %v669_v5  ;;  %682 = vmatpush.bf16.msra.mxu3 %v669_v5  ;;  %v524_v33 = vld [vmem:[#allocation3 + $0x18] sm:$0xf0]  ;;  %v650_v34 = vld [vmem:[#allocation3 + $0x54] sm:$0xf]  ;;  %v555_v37 = vor.u32 %v651_v31, %v554_v30  ;;  %v530_v40 = vld [vmem:[#allocation3 + $0x20] sm:$0xf] }
  0x17   :  { %v556_v35 = vld [vmem:[#allocation3 + $0x58] sm:$0xf0]  ;;  %v527_v38 = vor.u32 %v642_v32, %v524_v33  ;;  %v645_v41 = vld [vmem:[#allocation3 + $0x24] sm:$0xf0]  ;;  %v562_v42 = vld [vmem:[#allocation3 + $0x60] sm:$0xf] }
  0x18   :  { %v559_v39 = vor.u32 %v650_v34, %v556_v35  ;;  %v653_v43 = vld [vmem:[#allocation3 + $0x64] sm:$0xf0]  ;;  %v644_v44 = vld [vmem:[#allocation3 + $0x24] sm:$0xf]  ;;  %v532_v45 = vld [vmem:[#allocation3 + $0x28] sm:$0xf0]  ;;  %v531_v48 = vor.u32 %v645_v41, %v530_v40 }
  0x19   :  { %310 = vmatpush.bf16.msra.mxu0 %v660_v6  ;;  %675 = vmatpush.bf16.msra.mxu2 %v660_v6  ;;  %v652_v46 = vld [vmem:[#allocation3 + $0x64] sm:$0xf]  ;;  %v564_v47 = vld [vmem:[#allocation3 + $0x68] sm:$0xf0]  ;;  %v563_v49 = vor.u32 %v653_v43, %v562_v42  ;;  %v535_v50 = vor.u32 %v644_v44, %v532_v45  ;;  %v538_v52 = vld [vmem:[#allocation3 + $0x30] sm:$0xf] }
  0x1a   :  { %359 = vmatpush.bf16.msra.mxu1 %v668_v7  ;;  %683 = vmatpush.bf16.msra.mxu3 %v668_v7  ;;  %v567_v51 = vor.u32 %v652_v46, %v564_v47  ;;  %v647_v53 = vld [vmem:[#allocation3 + $0x34] sm:$0xf0]  ;;  %v570_v54 = vld [vmem:[#allocation3 + $0x70] sm:$0xf]  ;;  %v646_v56 = vld [vmem:[#allocation3 + $0x34] sm:$0xf] }
  0x1b   :  { %v655_v55 = vld [vmem:[#allocation3 + $0x74] sm:$0xf0]  ;;  %v540_v57 = vld [vmem:[#allocation3 + $0x38] sm:$0xf0]  ;;  %v654_v58 = vld [vmem:[#allocation3 + $0x74] sm:$0xf]  ;;  %v539_v60 = vor.u32 %v647_v53, %v538_v52 }
  0x1c   :  { %v572_v59 = vld [vmem:[#allocation3 + $0x78] sm:$0xf0]  ;;  %v571_v61 = vor.u32 %v655_v55, %v570_v54  ;;  %v543_v62 = vor.u32 %v646_v56, %v540_v57  ;;  %v813_v1 = vld [vmem:[%s839_s2] ss:$0 sm:$0xff]  ;;  %s780_s2 = smov [#allocation8]  }
  0x1d   :  { %311 = vmatpush.bf16.msra.mxu0 %v659_v8  ;;  %676 = vmatpush.bf16.msra.mxu2 %v659_v8  ;;  %v575_v63 = vor.u32 %v654_v58, %v572_v59  ;;  %s496_s26 = sshll.u32 %s780_s2, 4  ;;  %s497_s26 = int_to_ptr.vmem [resolvable:$true] %s496_s26 }
  0x1e   :  { %360 = vmatpush.bf16.msra.mxu1 %v667_v9  ;;  %684 = vmatpush.bf16.msra.mxu3 %v667_v9 }
  0x21   :  { %312 = vmatpush.bf16.msra.mxu0 %v658_v10  ;;  %677 = vmatpush.bf16.msra.mxu2 %v658_v10 }
  0x22   :  { %361 = vmatpush.bf16.msra.mxu1 %v666_v11  ;;  %685 = vmatpush.bf16.msra.mxu3 %v666_v11 }
  0x25   :  { %313 = vmatpush.bf16.msra.mxu0 %v657_v12  ;;  %678 = vmatpush.bf16.msra.mxu2 %v657_v12 }
  0x26   :  { %362 = vmatpush.bf16.msra.mxu1 %v665_v13  ;;  %686 = vmatpush.bf16.msra.mxu3 %v665_v13 }
  0x29   :  { %314 = vmatpush.bf16.msra.mxu0 %v656_v14  ;;  %679 = vmatpush.bf16.msra.mxu2 %v656_v14 }
  0x2a   :  { %363 = vmatpush.bf16.msra.mxu1 %v664_v15  ;;  %687 = vmatpush.bf16.msra.mxu3 %v664_v15 }
  0x2c   :  { %315 = vmatmul.bf16.vlgmr.msra.gmra.mxu0 %v515_v24  ;;  %335 = vmatmul.bf16.vlgmr.msra.gmra.mxu2 %v547_v25 }
  0x2d   :  { %364 = vmatmul.bf16.vlgmr.msra.gmra.mxu1 %v519_v26  ;;  %384 = vmatmul.bf16.vlgmr.msra.gmra.mxu3 %v551_v27 }
  0x3c   :  { %320 = vmatmul.bf16.gmra.mxu0 %v523_v36  ;;  %340 = vmatmul.bf16.gmra.mxu2 %v555_v37 }
  0x3d   :  { %369 = vmatmul.bf16.gmra.mxu1 %v527_v38  ;;  %389 = vmatmul.bf16.gmra.mxu3 %v559_v39 }
  0x4c   :  { %325 = vmatmul.bf16.gmra.mxu0 %v531_v48  ;;  %345 = vmatmul.bf16.gmra.mxu2 %v563_v49 }
  0x4d   :  { %374 = vmatmul.bf16.gmra.mxu1 %v535_v50  ;;  %394 = vmatmul.bf16.gmra.mxu3 %v567_v51 }
  0x5c   :  { %330 = vmatmul.bf16.gmra.mxu0 %v539_v60  ;;  %350 = vmatmul.bf16.gmra.mxu2 %v571_v61 }
  0x5d   :  { %379 = vmatmul.bf16.gmra.mxu1 %v543_v62  ;;  %399 = vmatmul.bf16.gmra.mxu3 %v575_v63 }
  0xa9   :  { %v316_v0 = vpop.f32.mrf.mxu0 }
  0xaa   :  { %v365_v2 = vpop.f32.mrf.mxu1 }
  0xab   :  { %v366_v3 = vadd.f32 %v365_v2, %v316_v0 }
  0xad   :  { %v460_v4 = vadd.f32 %v813_v1, %v366_v3 }
  0xaf   :  { %476 = vst [vmem:[#allocation8] sm:$0xff] %v460_v4  ;;  %v336_v5 = vpop.f32.mrf.mxu2 }
  0xb0   :  { %v385_v6 = vpop.f32.mrf.mxu3 }
  0xb1   :  { %v386_v7 = vadd.f32 %v385_v6, %v336_v5  ;;  %v318_v8 = vpop.f32.mrf.mxu0 }
  0xb2   :  { %v367_v9 = vpop.f32.mrf.mxu1 }
  0xb3   :  { %v468_v10 = vadd.f32 %v813_v1, %v386_v7  ;;  %v368_v11 = vadd.f32 %v367_v9, %v318_v8 }
  0xb5   :  { %484 = vst [vmem:[#allocation8 + $0x40] sm:$0xff] %v468_v10  ;;  %v461_v12 = vadd.f32 %v813_v1, %v368_v11 }
  0xb7   :  { %477 = vst [vmem:[#allocation8 + $0x8] sm:$0xff] %v461_v12  ;;  %v338_v13 = vpop.f32.mrf.mxu2 }
  0xb8   :  { %v387_v14 = vpop.f32.mrf.mxu3 }
  0xb9   :  { %v388_v15 = vadd.f32 %v387_v14, %v338_v13  ;;  %v321_v16 = vpop.f32.mrf.mxu0 }
  0xba   :  { %v370_v17 = vpop.f32.mrf.mxu1 }
  0xbb   :  { %v469_v18 = vadd.f32 %v813_v1, %v388_v15  ;;  %v371_v19 = vadd.f32 %v370_v17, %v321_v16 }
  0xbd   :  { %485 = vst [vmem:[#allocation8 + $0x48] sm:$0xff] %v469_v18  ;;  %v462_v20 = vadd.f32 %v813_v1, %v371_v19 }
  0xbf   :  { %478 = vst [vmem:[#allocation8 + $0x10] sm:$0xff] %v462_v20  ;;  %v341_v21 = vpop.f32.mrf.mxu2 }
  0xc0   :  { %v390_v22 = vpop.f32.mrf.mxu3 }
  0xc1   :  { %v391_v23 = vadd.f32 %v390_v22, %v341_v21  ;;  %v323_v24 = vpop.f32.mrf.mxu0 }
  0xc2   :  { %v372_v25 = vpop.f32.mrf.mxu1 }
  0xc3   :  { %v470_v26 = vadd.f32 %v813_v1, %v391_v23  ;;  %v373_v27 = vadd.f32 %v372_v25, %v323_v24 }
  0xc5   :  { %486 = vst [vmem:[#allocation8 + $0x50] sm:$0xff] %v470_v26  ;;  %v463_v28 = vadd.f32 %v813_v1, %v373_v27 }
  0xc7   :  { %479 = vst [vmem:[#allocation8 + $0x18] sm:$0xff] %v463_v28  ;;  %v343_v29 = vpop.f32.mrf.mxu2 }
  0xc8   :  { %v392_v30 = vpop.f32.mrf.mxu3 }
  0xc9   :  { %v393_v31 = vadd.f32 %v392_v30, %v343_v29  ;;  %v326_v32 = vpop.f32.mrf.mxu0 }
  0xca   :  { %v375_v33 = vpop.f32.mrf.mxu1 }
  0xcb   :  { %v471_v34 = vadd.f32 %v813_v1, %v393_v31  ;;  %v376_v35 = vadd.f32 %v375_v33, %v326_v32 }
  0xcd   :  { %487 = vst [vmem:[#allocation8 + $0x58] sm:$0xff] %v471_v34  ;;  %v464_v36 = vadd.f32 %v813_v1, %v376_v35 }
  0xcf   :  { %480 = vst [vmem:[#allocation8 + $0x20] sm:$0xff] %v464_v36  ;;  %v346_v37 = vpop.f32.mrf.mxu2 }
  0xd0   :  { %v395_v38 = vpop.f32.mrf.mxu3 }
  0xd1   :  { %v396_v39 = vadd.f32 %v395_v38, %v346_v37  ;;  %v328_v40 = vpop.f32.mrf.mxu0 }
  0xd2   :  { %v377_v41 = vpop.f32.mrf.mxu1 }
  0xd3   :  { %v472_v42 = vadd.f32 %v813_v1, %v396_v39  ;;  %v378_v43 = vadd.f32 %v377_v41, %v328_v40 }
  0xd5   :  { %488 = vst [vmem:[#allocation8 + $0x60] sm:$0xff] %v472_v42  ;;  %v465_v44 = vadd.f32 %v813_v1, %v378_v43 }
  0xd7   :  { %481 = vst [vmem:[#allocation8 + $0x28] sm:$0xff] %v465_v44  ;;  %v348_v45 = vpop.f32.mrf.mxu2 }
  0xd8   :  { %v397_v46 = vpop.f32.mrf.mxu3 }
  0xd9   :  { %v398_v47 = vadd.f32 %v397_v46, %v348_v45  ;;  %v331_v48 = vpop.f32.mrf.mxu0 }
  0xda   :  { %v380_v49 = vpop.f32.mrf.mxu1 }
  0xdb   :  { %v473_v50 = vadd.f32 %v813_v1, %v398_v47  ;;  %v381_v51 = vadd.f32 %v380_v49, %v331_v48 }
  0xdd   :  { %489 = vst [vmem:[#allocation8 + $0x68] sm:$0xff] %v473_v50  ;;  %v466_v52 = vadd.f32 %v813_v1, %v381_v51 }
  0xdf   :  { %482 = vst [vmem:[#allocation8 + $0x30] sm:$0xff] %v466_v52  ;;  %v351_v53 = vpop.f32.mrf.mxu2 }
  0xe0   :  { %v400_v54 = vpop.f32.mrf.mxu3 }
  0xe1   :  { %v401_v55 = vadd.f32 %v400_v54, %v351_v53  ;;  %v333_v56 = vpop.f32.mrf.mxu0 }
  0xe2   :  { %v382_v57 = vpop.f32.mrf.mxu1 }
  0xe3   :  { %v474_v58 = vadd.f32 %v813_v1, %v401_v55  ;;  %v383_v59 = vadd.f32 %v382_v57, %v333_v56 }
  0xe5   :  { %490 = vst [vmem:[#allocation8 + $0x70] sm:$0xff] %v474_v58  ;;  %v467_v60 = vadd.f32 %v813_v1, %v383_v59 }
  0xe7   :  { %483 = vst [vmem:[#allocation8 + $0x38] sm:$0xff] %v467_v60  ;;  %v353_v61 = vpop.f32.mrf.mxu2 }
  0xe8   :  { %v402_v62 = vpop.f32.mrf.mxu3 }
  0xe9   :  { %v403_v63 = vadd.f32 %v402_v62, %v353_v61 }
  0xeb   :  { %v475_v0 = vadd.f32 %v813_v1, %v403_v63 }
  0xed   :  { %491 = vst [vmem:[#allocation8 + $0x78] sm:$0xff] %v475_v0 }
  0xee   :  { %504 = dma.vmem_to_hbm [thread:$0]  %s497_s26, 2048, %s499_s29, [#allocation5], %s775_s20, %s775_s20, %s776_s21  }
  0xef   :  { %772 = dma.done.wait [#allocation5], 2048  }
  0xf0   :  { %773 = vsyncadd [#allocation5], 4294965248 }
  0xf1   :  { %509 = vsyncpa [#allocation4], 1 }
  0xf2   :  { %510 = vsyncpa [#allocation7], 1 }
  0xf3   :  { %511 = vsyncpa [#allocation5], 1 }

</bundles_post_ra>
